<compile_context>
chip_gen: v6e
topology: v6e:2x2x1
jax: 0.10.0
libtpu: 0.0.40
codegen_flags: <defaults>
</compile_context>

<pallas_src>
import jax
import jax.numpy as jnp
from jax.experimental import pallas as pl
from jax.experimental.pallas import tpu as pltpu

HIDDEN = 200        # true hidden size of the PyTorch module
HIDDEN_PAD = 256    # lane/MXU friendly padded hidden size
ACTION_PAD = 128    # lane-dense padded output width
NEG_BIG = -1.0e30   # finite "-inf" baked into padded b3 columns


def _round_up(n, m):
    return ((n + m - 1) // m) * m


# ---------------------------------------------------------------------------
# Kernel
# ---------------------------------------------------------------------------
def policy_kernel(x_ref, w1_ref, b1_ref, w2_ref, b2_ref, w3_ref, b3_ref, o_ref):
    # fc1 + relu (bf16 MXU operands, f32 accumulate). bf16 cast folded into the
    # activation so the f32 copy is short-lived.
    x = x_ref[...].astype(jnp.bfloat16)
    h1 = jnp.dot(x, w1_ref[...], preferred_element_type=jnp.float32) + b1_ref[...]
    h1 = jnp.maximum(h1, 0.0).astype(jnp.bfloat16)

    # fc2 + relu
    h2 = jnp.dot(h1, w2_ref[...], preferred_element_type=jnp.float32) + b2_ref[...]
    h2 = jnp.maximum(h2, 0.0).astype(jnp.bfloat16)

    # fc3: padded output columns carry b3 = -1e30 (baked in init_params) and
    # zero weights, so they can never win the max and exp() sends them to 0.
    # No per-tile iota/where masking needed.
    logits = jnp.dot(h2, w3_ref[...], preferred_element_type=jnp.float32) + b3_ref[...]

    # numerically stable softmax over the (padded) last dim
    m = jnp.max(logits, axis=-1, keepdims=True)
    e = jnp.exp(logits - m)
    denom = jnp.sum(e, axis=-1, keepdims=True)
    o_ref[...] = (e * pl.reciprocal(denom, approx=True)).astype(o_ref.dtype)


# ---------------------------------------------------------------------------
# Wrapper
# ---------------------------------------------------------------------------
def policy_forward(x, params, *, action_space, tb=2048):
    """x: [B, state_space] f32; params: padded (bf16 weights, f32 biases)."""
    w1, b1, w2, b2, w3, b3 = params
    B, S = x.shape
    H = w1.shape[1]           # HIDDEN_PAD
    A_pad = w3.shape[1]       # ACTION_PAD

    # Batch tile: as large as requested (amortizes ~0.35 us/step grid
    # overhead), but guarantee >= 2 grid steps whenever the batch allows it so
    # the "parallel" batch axis can shard across v7x's two TensorCores.
    B8 = _round_up(B, 8)
    TB = min(tb, B8)
    if B8 // TB < 2 and B8 >= 16:
        TB = _round_up(pl.cdiv(B8, 2), 8)
    B_pad = TB * pl.cdiv(B, TB)
    if B_pad != B:
        x = jnp.pad(x, ((0, B_pad - B), (0, 0)))
    grid = (B_pad // TB,)

    flops = 2 * B_pad * (S * H + H * H + H * A_pad)
    bytes_accessed = (
        B_pad * S * x.dtype.itemsize                            # x stream in
        + B_pad * A_pad * 4                                     # out stream
        + sum(int(p.size) * p.dtype.itemsize for p in params)   # resident weights
    )

    out = pl.pallas_call(
        policy_kernel,
        out_shape=jax.ShapeDtypeStruct((B_pad, A_pad), jnp.float32),
        grid=grid,
        in_specs=[
            pl.BlockSpec((TB, S), lambda i: (i, 0)),       # x tile streams
            pl.BlockSpec((S, H), lambda i: (0, 0)),        # w1 resident
            pl.BlockSpec((1, H), lambda i: (0, 0)),        # b1 resident
            pl.BlockSpec((H, H), lambda i: (0, 0)),        # w2 resident
            pl.BlockSpec((1, H), lambda i: (0, 0)),        # b2 resident
            pl.BlockSpec((H, A_pad), lambda i: (0, 0)),    # w3 resident
            pl.BlockSpec((1, A_pad), lambda i: (0, 0)),    # b3 resident (mask baked in)
        ],
        out_specs=pl.BlockSpec((TB, A_pad), lambda i: (i, 0)),
        compiler_params=pltpu.CompilerParams(
            dimension_semantics=("parallel",),             # v7x: shard batch over 2 TCs
            # Even at TB=2048 total footprint (double-buffered x/out tiles +
            # resident weights + f32/bf16 intermediates) is well under 32 MiB,
            # which is safe on every generation (v7x has 64 MiB/TC).
            vmem_limit_bytes=32 * 1024 * 1024,
        ),
        cost_estimate=pl.CostEstimate(
            flops=flops,
            transcendentals=B_pad * A_pad,
            bytes_accessed=bytes_accessed,
        ),
    )(x, w1, b1, w2, b2, w3, b3)

    return out[:B, :action_space]


# ---------------------------------------------------------------------------
# Parameters (match Policy.init_weights(): weight ~ N(0, 0.1), bias = 0),
# zero-pad hidden 200->256 and action->128, bake the softmax padding mask into
# b3 (padded columns = -1e30), store weights as bf16.
# ---------------------------------------------------------------------------
def init_params(key, state_space, action_space):
    k1, k2, k3 = jax.random.split(key, 3)
    w1 = 0.1 * jax.random.normal(k1, (state_space, HIDDEN), jnp.float32)
    w2 = 0.1 * jax.random.normal(k2, (HIDDEN, HIDDEN), jnp.float32)
    w3 = 0.1 * jax.random.normal(k3, (HIDDEN, action_space), jnp.float32)

    # zero-pad (padded hidden units stay exactly 0 through ReLU, so the
    # true-network output is unchanged)
    w1p = jnp.zeros((state_space, HIDDEN_PAD), jnp.float32).at[:, :HIDDEN].set(w1)
    w2p = jnp.zeros((HIDDEN_PAD, HIDDEN_PAD), jnp.float32).at[:HIDDEN, :HIDDEN].set(w2)
    w3p = jnp.zeros((HIDDEN_PAD, ACTION_PAD), jnp.float32).at[:HIDDEN, :action_space].set(w3)

    b1 = jnp.zeros((1, HIDDEN_PAD), jnp.float32)
    b2 = jnp.zeros((1, HIDDEN_PAD), jnp.float32)
    # true action columns get bias 0, padded columns get -1e30 so exp() -> 0
    b3 = jnp.full((1, ACTION_PAD), NEG_BIG, jnp.float32).at[:, :action_space].set(0.0)

    return (w1p.astype(jnp.bfloat16), b1,
            w2p.astype(jnp.bfloat16), b2,
            w3p.astype(jnp.bfloat16), b3)


# Pure-JAX reference with the same bf16-operand / f32-accumulate contract.
def policy_reference(x, params, action_space):
    w1, b1, w2, b2, w3, b3 = params
    h1 = jnp.maximum(jnp.dot(x.astype(jnp.bfloat16), w1,
                             preferred_element_type=jnp.float32) + b1, 0.0)
    h2 = jnp.maximum(jnp.dot(h1.astype(jnp.bfloat16), w2,
                             preferred_element_type=jnp.float32) + b2, 0.0)
    logits = jnp.dot(h2.astype(jnp.bfloat16), w3,
                     preferred_element_type=jnp.float32) + b3
    logits = logits[:, :action_space]      # padded (-1e30) columns sliced away
    return jax.nn.softmax(logits, axis=-1)


if __name__ == "__main__":
    state_space = 16
    action_space = 8

    key = jax.random.PRNGKey(0)
    kx, kp = jax.random.split(key)
    params = init_params(kp, state_space, action_space)

    # --- small batch (padded to 8 rows internally, single grid step) ---
    batch = 4
    x = jax.random.normal(kx, (batch, state_space), jnp.float32)
    out = policy_forward(x, params, action_space=action_space)
    jax.block_until_ready(out)
    assert out.shape == (batch, action_space)
    assert jnp.allclose(jnp.sum(out, axis=-1), 1.0, atol=5e-3)
    ref = policy_reference(x, params, action_space)
    assert jnp.allclose(out, ref, atol=5e-3), "mismatch vs reference (small batch)"

    # --- medium batch, default tb: exercises the >=2-grid-step split path ---
    batch2 = 40
    x2 = jax.random.normal(jax.random.PRNGKey(1), (batch2, state_space), jnp.float32)
    out2 = policy_forward(x2, params, action_space=action_space)
    jax.block_until_ready(out2)
    assert out2.shape == (batch2, action_space)
    assert jnp.allclose(jnp.sum(out2, axis=-1), 1.0, atol=5e-3)
    ref2 = policy_reference(x2, params, action_space)
    assert jnp.allclose(out2, ref2, atol=5e-3), "mismatch vs reference (split grid)"

    # --- same batch with a tiny tile to exercise a multi-step pipeline ---
    out3 = policy_forward(x2, params, action_space=action_space, tb=8)
    jax.block_until_ready(out3)
    assert out3.shape == (batch2, action_space)
    assert jnp.allclose(out3, ref2, atol=5e-3), "mismatch vs reference (gridded batch)"

    print("KERNEL_OK")
</pallas_src>

<mosaic_0001>
module attributes {stable_mosaic.version = 11 : i64} {
  func.func @policy_kernel(%arg0: i32, %arg1: memref<8x16xf32, #tpu.memory_space<vmem>>, %arg2: memref<16x256xbf16, #tpu.memory_space<vmem>>, %arg3: memref<1x256xf32, #tpu.memory_space<vmem>>, %arg4: memref<256x256xbf16, #tpu.memory_space<vmem>>, %arg5: memref<1x256xf32, #tpu.memory_space<vmem>>, %arg6: memref<256x128xbf16, #tpu.memory_space<vmem>>, %arg7: memref<1x128xf32, #tpu.memory_space<vmem>>, %arg8: memref<8x128xf32, #tpu.memory_space<vmem>>) attributes {dimension_semantics = [#tpu.dimension_semantics<parallel>], iteration_bounds = array<i64: 1>, scalar_prefetch = 0 : i64, scratch_operands = 0 : i64, tpu.core_type = #tpu.core_type<tc>, window_params = [{transform_indices = @transform_0, window_bounds = array<i64: 8, 16>}, {pipeline_mode = #tpu.pipeline_mode<synchronous>, transform_indices = @transform_1, window_bounds = array<i64: 16, 256>}, {pipeline_mode = #tpu.pipeline_mode<synchronous>, transform_indices = @transform_2, window_bounds = array<i64: 1, 256>}, {pipeline_mode = #tpu.pipeline_mode<synchronous>, transform_indices = @transform_3, window_bounds = array<i64: 256, 256>}, {pipeline_mode = #tpu.pipeline_mode<synchronous>, transform_indices = @transform_4, window_bounds = array<i64: 1, 256>}, {pipeline_mode = #tpu.pipeline_mode<synchronous>, transform_indices = @transform_5, window_bounds = array<i64: 256, 128>}, {pipeline_mode = #tpu.pipeline_mode<synchronous>, transform_indices = @transform_6, window_bounds = array<i64: 1, 128>}, {transform_indices = @transform_7, window_bounds = array<i64: 8, 128>}]} {
    %c0 = arith.constant 0 : index
    %c0_0 = arith.constant 0 : index
    %0 = vector.load %arg1[%c0, %c0_0] : memref<8x16xf32, #tpu.memory_space<vmem>>, vector<8x16xf32>
    %1 = arith.truncf %0 : vector<8x16xf32> to vector<8x16xbf16>
    %c0_1 = arith.constant 0 : index
    %c0_2 = arith.constant 0 : index
    %2 = vector.load %arg2[%c0_1, %c0_2] : memref<16x256xbf16, #tpu.memory_space<vmem>>, vector<16x256xbf16>
    %cst = arith.constant dense<0.000000e+00> : vector<8x256xf32>
    %3 = tpu.matmul %1, %2, %cst {dimension_numbers = #tpu.dot_dimension_numbers<[1], [0], [0], [1], [0, 0, 1, 1], [], []>} : vector<8x16xbf16>, vector<16x256xbf16>, vector<8x256xf32> -> vector<8x256xf32>
    %c0_3 = arith.constant 0 : index
    %c0_4 = arith.constant 0 : index
    %4 = vector.load %arg3[%c0_3, %c0_4] : memref<1x256xf32, #tpu.memory_space<vmem>>, vector<1x256xf32>
    %5 = vector.broadcast %4 : vector<1x256xf32> to vector<8x256xf32>
    %6 = arith.addf %3, %5 : vector<8x256xf32>
    %cst_5 = arith.constant 0.000000e+00 : f32
    %7 = vector.broadcast %cst_5 : f32 to vector<8x256xf32>
    %8 = arith.maximumf %6, %7 : vector<8x256xf32>
    %9 = arith.truncf %8 : vector<8x256xf32> to vector<8x256xbf16>
    %c0_6 = arith.constant 0 : index
    %c0_7 = arith.constant 0 : index
    %10 = vector.load %arg4[%c0_6, %c0_7] : memref<256x256xbf16, #tpu.memory_space<vmem>>, vector<256x256xbf16>
    %cst_8 = arith.constant dense<0.000000e+00> : vector<8x256xf32>
    %11 = tpu.matmul %9, %10, %cst_8 {dimension_numbers = #tpu.dot_dimension_numbers<[1], [0], [0], [1], [0, 0, 1, 1], [], []>} : vector<8x256xbf16>, vector<256x256xbf16>, vector<8x256xf32> -> vector<8x256xf32>
    %c0_9 = arith.constant 0 : index
    %c0_10 = arith.constant 0 : index
    %12 = vector.load %arg5[%c0_9, %c0_10] : memref<1x256xf32, #tpu.memory_space<vmem>>, vector<1x256xf32>
    %13 = vector.broadcast %12 : vector<1x256xf32> to vector<8x256xf32>
    %14 = arith.addf %11, %13 : vector<8x256xf32>
    %cst_11 = arith.constant 0.000000e+00 : f32
    %15 = vector.broadcast %cst_11 : f32 to vector<8x256xf32>
    %16 = arith.maximumf %14, %15 : vector<8x256xf32>
    %17 = arith.truncf %16 : vector<8x256xf32> to vector<8x256xbf16>
    %c0_12 = arith.constant 0 : index
    %c0_13 = arith.constant 0 : index
    %18 = vector.load %arg6[%c0_12, %c0_13] : memref<256x128xbf16, #tpu.memory_space<vmem>>, vector<256x128xbf16>
    %cst_14 = arith.constant dense<0.000000e+00> : vector<8x128xf32>
    %19 = tpu.matmul %17, %18, %cst_14 {dimension_numbers = #tpu.dot_dimension_numbers<[1], [0], [0], [1], [0, 0, 1, 1], [], []>} : vector<8x256xbf16>, vector<256x128xbf16>, vector<8x128xf32> -> vector<8x128xf32>
    %c0_15 = arith.constant 0 : index
    %c0_16 = arith.constant 0 : index
    %20 = vector.load %arg7[%c0_15, %c0_16] : memref<1x128xf32, #tpu.memory_space<vmem>>, vector<1x128xf32>
    %21 = vector.broadcast %20 : vector<1x128xf32> to vector<8x128xf32>
    %22 = arith.addf %19, %21 : vector<8x128xf32>
    %cst_17 = arith.constant dense<0xFF800000> : vector<8xf32>
    %23 = vector.multi_reduction <maximumf>, %22, %cst_17 [1] : vector<8x128xf32> to vector<8xf32>
    %24 = vector.shape_cast %23 : vector<8xf32> to vector<8x1xf32>
    %25 = vector.broadcast %24 : vector<8x1xf32> to vector<8x128xf32>
    %26 = arith.subf %22, %25 : vector<8x128xf32>
    %27 = math.exp %26 : vector<8x128xf32>
    %cst_18 = arith.constant dense<0.000000e+00> : vector<8xf32>
    %28 = vector.multi_reduction <add>, %27, %cst_18 [1] : vector<8x128xf32> to vector<8xf32>
    %29 = vector.shape_cast %28 : vector<8xf32> to vector<8x1xf32>
    %30 = tpu.reciprocal %29 {approx = true} : vector<8x1xf32> -> vector<8x1xf32>
    %31 = vector.broadcast %30 : vector<8x1xf32> to vector<8x128xf32>
    %32 = arith.mulf %27, %31 : vector<8x128xf32>
    %c0_19 = arith.constant 0 : index
    %c0_20 = arith.constant 0 : index
    %33 = vector.load %arg8[%c0_19, %c0_20] : memref<8x128xf32, #tpu.memory_space<vmem>>, vector<8x128xf32>
    tpu.vector_store %arg8[%c0_19, %c0_20], %32 {strides = array<i32>} : memref<8x128xf32, #tpu.memory_space<vmem>>, vector<8x128xf32>,
    return
  }
  func.func @transform_0(%arg0: i32) -> (i32, i32) {
    %c0_i32 = arith.constant 0 : i32
    %c0_i32_0 = arith.constant 0 : i32
    return %arg0, %c0_i32 : i32, i32
  }
  func.func @transform_1(%arg0: i32) -> (i32, i32) {
    %c0_i32 = arith.constant 0 : i32
    %c0_i32_0 = arith.constant 0 : i32
    %c0_i32_1 = arith.constant 0 : i32
    return %c0_i32, %c0_i32_0 : i32, i32
  }
  func.func @transform_2(%arg0: i32) -> (i32, i32) {
    %c0_i32 = arith.constant 0 : i32
    %c0_i32_0 = arith.constant 0 : i32
    %c0_i32_1 = arith.constant 0 : i32
    return %c0_i32, %c0_i32_0 : i32, i32
  }
  func.func @transform_3(%arg0: i32) -> (i32, i32) {
    %c0_i32 = arith.constant 0 : i32
    %c0_i32_0 = arith.constant 0 : i32
    %c0_i32_1 = arith.constant 0 : i32
    return %c0_i32, %c0_i32_0 : i32, i32
  }
  func.func @transform_4(%arg0: i32) -> (i32, i32) {
    %c0_i32 = arith.constant 0 : i32
    %c0_i32_0 = arith.constant 0 : i32
    %c0_i32_1 = arith.constant 0 : i32
    return %c0_i32, %c0_i32_0 : i32, i32
  }
  func.func @transform_5(%arg0: i32) -> (i32, i32) {
    %c0_i32 = arith.constant 0 : i32
    %c0_i32_0 = arith.constant 0 : i32
    %c0_i32_1 = arith.constant 0 : i32
    return %c0_i32, %c0_i32_0 : i32, i32
  }
  func.func @transform_6(%arg0: i32) -> (i32, i32) {
    %c0_i32 = arith.constant 0 : i32
    %c0_i32_0 = arith.constant 0 : i32
    %c0_i32_1 = arith.constant 0 : i32
    return %c0_i32, %c0_i32_0 : i32, i32
  }
  func.func @transform_7(%arg0: i32) -> (i32, i32) {
    %c0_i32 = arith.constant 0 : i32
    %c0_i32_0 = arith.constant 0 : i32
    return %arg0, %c0_i32 : i32, i32
  }
}

</mosaic_0001>

<bundles_post_ra>
// kernel: tpu_custom_call.1
= control target key start
LH: loop header
LB: loop body
LE: loop exit
PB: predicated region body
PF: predicated region fallthrough
CT: control target
= control target key end

     0   :  { %12 = vsyncpa [#allocation3], 0  ;;  %s944_s0 = inlined_call_operand.hbm [shape: f32[8,16], index: 0, kind: input, shape index: {}]   ;;  %s945_s1 = inlined_call_operand.hbm [shape: bf16[16,256], index: 1, kind: input, shape index: {}]   ;;  %s946_s2 = inlined_call_operand.vmem [shape: f32[1,256], index: 2, kind: input, shape index: {}]   ;;  %s947_s3 = inlined_call_operand.hbm [shape: bf16[256,256], index: 3, kind: input, shape index: {}]   ;;  %s948_s4 = inlined_call_operand.vmem [shape: f32[1,256], index: 4, kind: input, shape index: {}]   ;;  %s949_s5 = inlined_call_operand.hbm [shape: bf16[256,128], index: 5, kind: input, shape index: {}]   ;;  %s950_s6 = inlined_call_operand.vmem [shape: f32[1,128], index: 6, kind: input, shape index: {}]   ;;  %s951_s7 = inlined_call_operand.hbm [shape: f32[8,128], index: 7, kind: output, shape index: {}]  }
   0x1   :  { %13 = vsyncpa [#allocation6], 0 }
   0x2   :  { %14 = vsyncpa [#allocation9], 0 }
   0x3   :  { %15 = vsyncpa [#allocation4], 0  ;;  %s870_s24 = smov [#allocation5]  }
   0x4   :  { %s31_s25 = sshll.u32 %s870_s24, 4  ;;  %s32_s25 = int_to_ptr.vmem [resolvable:$true] %s31_s25 }
   0x5   :  { %s770_s26 = scalar_lea.vmem %s32_s25, 256  ;;  %p775_p1 = scmp.lt.s32.totalorder %s32_s25, %s32_s25 }
   0x6   :  { %p771_p0 = scmp.ne.s32.totalorder %s32_s25, %s770_s26  ;;  %p776_p2 = scmp.lt.s32.totalorder %s770_s26, %s770_s26 }
   0x8   :  { %p777_p3 = por %p776_p2, %p775_p1 }
   0xa   :  { %p778_p4 = pnand %p777_p3, %p771_p0 }
   0xc   :  { %781 = shalt.err (!%p778_p4)
}
   0xd   :  { %s871_s27 = smov 128   ;;  %s872_s28 = smov 8  }
   0xe   :  { %37 = dma.hbm_to_vmem [thread:$0]  %s945_s1, 256, %s32_s25, [#allocation6], %s871_s27, %s871_s27, %s872_s28  }
   0xf   :  { %s873_s8 = smov [#allocation2]   ;;  %s874_s10 = smov [#allocation7]  }
  0x10   :  { %s22_s9 = sshll.u32 %s873_s8, 4  ;;  %s45_s11 = sshll.u32 %s874_s10, 4  ;;  %s23_s9 = int_to_ptr.vmem [resolvable:$true] %s22_s9  ;;  %s46_s11 = int_to_ptr.vmem [resolvable:$true] %s45_s11 }
  0x11   :  { %s790_s12 = scalar_lea.vmem %s23_s9, 128  ;;  %p795_p6 = scmp.lt.s32.totalorder %s23_s9, %s23_s9 }
  0x12   :  { %p791_p5 = scmp.ne.s32.totalorder %s23_s9, %s790_s12  ;;  %p796_p7 = scmp.lt.s32.totalorder %s790_s12, %s790_s12 }
  0x14   :  { %p797_p8 = por %p796_p7, %p795_p6 }
  0x16   :  { %p798_p9 = pnand %p797_p8, %p791_p5 }
  0x18   :  { %801 = shalt.err (!%p798_p9)
}
  0x19   :  { %25 = dma.hbm_to_vmem [thread:$0]  %s944_s0, 128, %s23_s9, [#allocation3]  }
  0x1a   :  { %s810_s15 = scalar_lea.vmem %s46_s11, 4096  ;;  %p815_p11 = scmp.lt.s32.totalorder %s46_s11, %s46_s11 }
  0x1b   :  { %p811_p10 = scmp.ne.s32.totalorder %s46_s11, %s810_s15  ;;  %p816_p12 = scmp.lt.s32.totalorder %s810_s15, %s810_s15 }
  0x1d   :  { %p817_p13 = por %p816_p12, %p815_p11 }
  0x1f   :  { %p818_p0 = pnand %p817_p13, %p811_p10 }
  0x21   :  { %821 = shalt.err (!%p818_p0)
}
  0x22   :  { %51 = dma.hbm_to_vmem [thread:$0]  %s947_s3, 4096, %s46_s11, [#allocation6], %s871_s27, %s871_s27, %s872_s28  }
  0x23   :  { %s875_s17 = smov [#allocation8]  }
  0x24   :  { %s59_s18 = sshll.u32 %s875_s17, 4  ;;  %s60_s18 = int_to_ptr.vmem [resolvable:$true] %s59_s18 }
  0x25   :  { %s830_s19 = scalar_lea.vmem %s60_s18, 2048  ;;  %p835_p2 = scmp.lt.s32.totalorder %s60_s18, %s60_s18 }
  0x26   :  { %p831_p1 = scmp.ne.s32.totalorder %s60_s18, %s830_s19  ;;  %p836_p3 = scmp.lt.s32.totalorder %s830_s19, %s830_s19 }
  0x28   :  { %p837_p4 = por %p836_p3, %p835_p2 }
  0x2a   :  { %p838_p5 = pnand %p837_p4, %p831_p1 }
  0x2c   :  { %841 = shalt.err (!%p838_p5)
}
  0x2d   :  { %s876_s0 = smov 64   ;;  %s877_s20 = smov 4  }
  0x2e   :  { %65 = dma.hbm_to_vmem [thread:$0]  %s949_s5, 2048, %s60_s18, [#allocation9], %s876_s0, %s876_s0, %s877_s20  }
  0x2f   :  { %862 = dma.done.wait [#allocation3], 128  }
  0x30   :  { %863 = vsyncadd [#allocation3], 4294967168 }
  0x31   :  { %864 = dma.done.wait [#allocation6], 4352  }
  0x32   :  { %865 = vsyncadd [#allocation6], 4294962944 }
  0x33   :  { %866 = dma.done.wait [#allocation9], 2048  }
  0x34   :  { %867 = vsyncadd [#allocation9], 4294965248  ;;  %v878_v0 = vmov 0   ;;  %v691_v1 = vld [vmem:[#allocation5 + $0x4] ss:$8 sps:$4 sm:$0xff]   ;;  %v81_v3 = vld [vmem:[#allocation2] sm:$0xff]  ;;  %v87_v49 = vlaneseq }
  0x35   :  { %143 = vmatprep.mubr.bf16.mxu0 %v878_v0  ;;  %v693_v2 = vld [vmem:[#allocation5] ss:$8 sps:$4 sm:$0xff]   ;;  %125 = vmatprep.subr.bf16.mxu0 %v691_v1  ;;  %v82_v4 = vpack.c.bf16 %v81_v3, %v81_v3  ;;  %v694_v5 = vld [vmem:[#allocation7 + $0x74] ss:$8 sps:$4 sm:$0xff]   ;;  %vm107_vm0 = vcmask 130048   ;;  %v746_v41 = vld [vmem:[#allocation8 + $0x68] sm:$0xff]  }
  0x36   :  { %v696_v6 = vld [vmem:[#allocation7 + $0x70] ss:$8 sps:$4 sm:$0xff]   ;;  %126 = vmatpush1.bf16.msra.mxu0 %v693_v2  ;;  %v697_v7 = vld [vmem:[#allocation7 + $0x64] ss:$8 sps:$4 sm:$0xff]   ;;  %360 = vmatprep.subr.bf16.mxu1 %v694_v5  ;;  %v699_v8 = vld [vmem:[#allocation7 + $0x60] ss:$8 sps:$4 sm:$0xff]  }
  0x37   :  { %361 = vmatpush1.bf16.msra.mxu1 %v696_v6  ;;  %v700_v9 = vld [vmem:[#allocation7 + $0x54] ss:$8 sps:$4 sm:$0xff]   ;;  %v702_v10 = vld [vmem:[#allocation7 + $0x50] ss:$8 sps:$4 sm:$0xff]   ;;  %v703_v11 = vld [vmem:[#allocation7 + $0x44] ss:$8 sps:$4 sm:$0xff]  }
  0x38   :  { %362 = vmatprep.subr.bf16.mxu1 %v697_v7  ;;  %v705_v12 = vld [vmem:[#allocation7 + $0x40] ss:$8 sps:$4 sm:$0xff]   ;;  %v706_v13 = vld [vmem:[#allocation7 + $0x34] ss:$8 sps:$4 sm:$0xff]   ;;  %v708_v14 = vld [vmem:[#allocation7 + $0x30] ss:$8 sps:$4 sm:$0xff]  }
  0x39   :  { %609 = vmatmul.mubr.msk.bf16.vlgmr.msra.gmra.mxu0 %vm107_vm0, %v82_v4  ;;  %v709_v15 = vld [vmem:[#allocation7 + $0x24] ss:$8 sps:$4 sm:$0xff]   ;;  %v711_v16 = vld [vmem:[#allocation7 + $0x20] ss:$8 sps:$4 sm:$0xff]   ;;  %v712_v17 = vld [vmem:[#allocation7 + $0x14] ss:$8 sps:$4 sm:$0xff]  }
  0x3a   :  { %v714_v18 = vld [vmem:[#allocation7 + $0x10] ss:$8 sps:$4 sm:$0xff]   ;;  %v715_v19 = vld [vmem:[#allocation7 + $0x4] ss:$8 sps:$4 sm:$0xff]   ;;  %v717_v20 = vld [vmem:[#allocation7] ss:$8 sps:$4 sm:$0xff]  }
  0x3b   :  { %363 = vmatpush1.bf16.msra.mxu1 %v699_v8  ;;  %v718_v21 = vld [vmem:[#allocation7 + $0xf4] ss:$8 sps:$4 sm:$0xff]   ;;  %v720_v22 = vld [vmem:[#allocation7 + $0xf0] ss:$8 sps:$4 sm:$0xff]   ;;  %v721_v23 = vld [vmem:[#allocation7 + $0xe4] ss:$8 sps:$4 sm:$0xff]  }
  0x3c   :  { %364 = vmatprep.subr.bf16.mxu1 %v700_v9  ;;  %v723_v24 = vld [vmem:[#allocation7 + $0xe0] ss:$8 sps:$4 sm:$0xff]   ;;  %v724_v25 = vld [vmem:[#allocation7 + $0xd4] ss:$8 sps:$4 sm:$0xff]   ;;  %v726_v26 = vld [vmem:[#allocation7 + $0xd0] ss:$8 sps:$4 sm:$0xff]  }
  0x3d   :  { %v727_v27 = vld [vmem:[#allocation7 + $0xc4] ss:$8 sps:$4 sm:$0xff]   ;;  %v729_v28 = vld [vmem:[#allocation7 + $0xc0] ss:$8 sps:$4 sm:$0xff]   ;;  %v730_v29 = vld [vmem:[#allocation7 + $0xb4] ss:$8 sps:$4 sm:$0xff]  }
  0x3e   :  { %v732_v30 = vld [vmem:[#allocation7 + $0xb0] ss:$8 sps:$4 sm:$0xff]   ;;  %v733_v31 = vld [vmem:[#allocation7 + $0xa4] ss:$8 sps:$4 sm:$0xff]   ;;  %v735_v32 = vld [vmem:[#allocation7 + $0xa0] ss:$8 sps:$4 sm:$0xff]  }
  0x3f   :  { %365 = vmatpush1.bf16.msra.mxu1 %v702_v10  ;;  %v736_v33 = vld [vmem:[#allocation7 + $0x94] ss:$8 sps:$4 sm:$0xff]   ;;  %v738_v34 = vld [vmem:[#allocation7 + $0x90] ss:$8 sps:$4 sm:$0xff]   ;;  %v739_v35 = vld [vmem:[#allocation7 + $0x84] ss:$8 sps:$4 sm:$0xff]  }
  0x40   :  { %366 = vmatprep.subr.bf16.mxu1 %v703_v11  ;;  %v741_v36 = vld [vmem:[#allocation7 + $0x80] ss:$8 sps:$4 sm:$0xff]   ;;  %v742_v37 = vld [vmem:[#allocation8 + $0x78] sm:$0xff]   ;;  %v744_v39 = vld [vmem:[#allocation8 + $0x70] sm:$0xff]   ;;  %v88_v50 = vshrl.u32 %v87_v49, 7 }
  0x41   :  { %v743_v38 = vld [vmem:[#allocation8 + $0x38] sm:$0xff]   ;;  %659 = vmatprep.subr.bf16.mxu0 %v742_v37  ;;  %v745_v40 = vld [vmem:[#allocation8 + $0x30] sm:$0xff]   ;;  %v747_v42 = vld [vmem:[#allocation8 + $0x28] sm:$0xff]  }
  0x42   :  { %660 = vmatpush3.bf16.msra.mxu0 %v743_v38  ;;  %v748_v43 = vld [vmem:[#allocation8 + $0x60] sm:$0xff]   ;;  %v750_v45 = vld [vmem:[#allocation8 + $0x58] sm:$0xff]   ;;  %v752_v47 = vld [vmem:[#allocation8 + $0x50] sm:$0xff]   ;;  %v89_v51 = vsub.s32 0, %v88_v50  ;;  %v93_v53 = vsub.s32 1, %v88_v50 }
  0x43   :  { %367 = vmatpush1.bf16.msra.mxu1 %v705_v12  ;;  %661 = vmatprep.subr.bf16.mxu0 %v744_v39  ;;  %v749_v44 = vld [vmem:[#allocation8 + $0x20] sm:$0xff]   ;;  %v751_v46 = vld [vmem:[#allocation8 + $0x18] sm:$0xff]   ;;  %v753_v48 = vld [vmem:[#allocation8 + $0x10] sm:$0xff]  }
  0x44   :  { %368 = vmatprep.subr.bf16.mxu1 %v706_v13  ;;  %v85_v52 = vld [vmem:[%s946_s2] sm:$0x3]  ;;  %v756_v4 = vld [vmem:[#allocation8 + $0x40] sm:$0xff]  }
  0x45   :  { %v90_v54 = vrot.slane %v85_v52, %v89_v51  ;;  %v94_v55 = vrot.slane %v85_v52, %v93_v53  ;;  %v754_v2 = vld [vmem:[#allocation8 + $0x48] sm:$0xff]   ;;  %v757_v5 = vld [vmem:[#allocation8] sm:$0xff]  }
  0x46   :  { %662 = vmatpush3.bf16.msra.mxu0 %v745_v40  ;;  %v755_v3 = vld [vmem:[#allocation8 + $0x8] sm:$0xff]  }
  0x47   :  { %369 = vmatpush1.bf16.msra.mxu1 %v708_v14  ;;  %663 = vmatprep.subr.bf16.mxu0 %v746_v41  ;;  %v188_v6 = vld [vmem:[%s948_s4] sm:$0x3]  ;;  %s879_s4 = smov [#allocation10]  }
  0x48   :  { %370 = vmatprep.subr.bf16.mxu1 %v709_v15  ;;  %v193_v7 = vrot.slane %v188_v6, %v89_v51  ;;  %v197_v8 = vrot.slane %v188_v6, %v93_v53  ;;  %s596_s26 = sshll.u32 %s879_s4, 4  ;;  %s597_s26 = int_to_ptr.vmem [resolvable:$true] %s596_s26 }
  0x49   :  { %p847_p7 = scmp.lt.s32.totalorder %s597_s26, %s597_s26 }
  0x4a   :  { %664 = vmatpush3.bf16.msra.mxu0 %v747_v42 }
  0x4b   :  { %371 = vmatpush1.bf16.msra.mxu1 %v711_v16  ;;  %665 = vmatprep.subr.bf16.mxu0 %v748_v43 }
  0x4c   :  { %372 = vmatprep.subr.bf16.mxu1 %v712_v17 }
  0x4e   :  { %666 = vmatpush3.bf16.msra.mxu0 %v749_v44 }
  0x4f   :  { %373 = vmatpush1.bf16.msra.mxu1 %v714_v18  ;;  %667 = vmatprep.subr.bf16.mxu0 %v750_v45 }
  0x50   :  { %374 = vmatprep.subr.bf16.mxu1 %v715_v19 }
  0x52   :  { %668 = vmatpush3.bf16.msra.mxu0 %v751_v46 }
  0x53   :  { %375 = vmatpush1.bf16.msra.mxu1 %v717_v20  ;;  %669 = vmatprep.subr.bf16.mxu0 %v752_v47 }
  0x54   :  { %376 = vmatprep.subr.bf16.mxu1 %v718_v21  ;;  %v642_v21 = vld [vmem:[%s950_s6] ss:$0 sm:$0xff]  ;;  %s842_s6 = scalar_lea.vmem %s597_s26, 128 }
  0x55   :  { %p843_p6 = scmp.ne.s32.totalorder %s597_s26, %s842_s6  ;;  %p848_p8 = scmp.lt.s32.totalorder %s842_s6, %s842_s6 }
  0x56   :  { %670 = vmatpush3.bf16.msra.mxu0 %v753_v48 }
  0x57   :  { %377 = vmatpush2.bf16.msra.mxu1 %v720_v22  ;;  %671 = vmatprep.subr.bf16.mxu0 %v754_v2  ;;  %p849_p9 = por %p848_p8, %p847_p7 }
  0x58   :  { %378 = vmatprep.subr.bf16.mxu1 %v721_v23 }
  0x59   :  { %p850_p10 = pnand %p849_p9, %p843_p6 }
  0x5a   :  { %672 = vmatpush3.bf16.msra.mxu0 %v755_v3 }
  0x5b   :  { %379 = vmatpush2.bf16.msra.mxu1 %v723_v24  ;;  %673 = vmatprep.subr.bf16.mxu0 %v756_v4 }
  0x5c   :  { %380 = vmatprep.subr.bf16.mxu1 %v724_v25 }
  0x5e   :  { %674 = vmatpush3.bf16.msra.mxu0 %v757_v5 }
  0x5f   :  { %381 = vmatpush2.bf16.msra.mxu1 %v726_v26 }
  0x60   :  { %382 = vmatprep.subr.bf16.mxu1 %v727_v27 }
  0x63   :  { %383 = vmatpush2.bf16.msra.mxu1 %v729_v28 }
  0x64   :  { %384 = vmatprep.subr.bf16.mxu1 %v730_v29 }
  0x67   :  { %385 = vmatpush2.bf16.msra.mxu1 %v732_v30 }
  0x68   :  { %386 = vmatprep.subr.bf16.mxu1 %v733_v31 }
  0x6b   :  { %387 = vmatpush2.bf16.msra.mxu1 %v735_v32 }
  0x6c   :  { %388 = vmatprep.subr.bf16.mxu1 %v736_v33 }
  0x6f   :  { %389 = vmatpush2.bf16.msra.mxu1 %v738_v34 }
  0x70   :  { %390 = vmatprep.subr.bf16.mxu1 %v739_v35 }
  0x73   :  { %391 = vmatpush2.bf16.msra.mxu1 %v741_v36 }
  0xf9   :  { %v145_v56 = vpop.f32.mrf.mxu0 }
  0xfa   :  { %v146_v57 = vadd.f32 %v145_v56, %v90_v54 }
  0xfb   :  { %v147_v58 = vpop.f32.mrf.mxu0 }
  0xfc   :  { %v148_v59 = vadd.f32 %v147_v58, %v94_v55  ;;  %v152_v60 = vmax.f32 %v146_v57, 0.0 }
  0xfd   :  { %v149_v61 = vpop.f32.mrf.mxu0 }
  0xfe   :  { %v153_v62 = vmax.f32 %v148_v59, 0.0  ;;  %v154_v1 = vpack.c.bf16 %v152_v60, %v152_v60 }
  0xff   :  { %v150_v63 = vpop.f32.mrf.mxu0 }
 0x100   :  { %v155_v0 = vpack.c.bf16 %v153_v62, %v153_v62 }
 0x102   :  { %392 = vmatprep.mubr.bf16.mxu1 %v155_v0 }
 0x103   :  { %393 = vmatmul.mubr.bf16.vlgmr.msra.gmra.mxu1 %v154_v1 }
 0x1c3   :  { %v394_v9 = vpop.f32.mrf.mxu1 }
 0x1c4   :  { %v395_v10 = vadd.f32 %v394_v9, %v193_v7 }
 0x1c5   :  { %v396_v11 = vpop.f32.mrf.mxu1 }
 0x1c6   :  { %v397_v12 = vadd.f32 %v396_v11, %v197_v8  ;;  %v401_v13 = vmax.f32 %v395_v10, 0.0 }
 0x1c7   :  { %v398_v14 = vpop.f32.mrf.mxu1 }
 0x1c8   :  { %v402_v15 = vmax.f32 %v397_v12, 0.0  ;;  %v403_v18 = vpack.c.bf16 %v401_v13, %v401_v13 }
 0x1c9   :  { %v399_v16 = vpop.f32.mrf.mxu1 }
 0x1ca   :  { %v404_v17 = vpack.c.bf16 %v402_v15, %v402_v15 }
 0x1cc   :  { %572 = vmatprep.mubr.bf16.mxu0 %v404_v17 }
 0x1cd   :  { %573 = vmatmul.mubr.bf16.vlgmr.msra.gmra.mxu0 %v403_v18 }
 0x28d   :  { %v675_v19 = vpop.f32.mrf.mxu0 }
 0x28f   :  { %v676_v20 = vpop.f32.mrf.mxu0 }
 0x290   :  { %v677_v22 = vadd.f32 %v676_v20, %v675_v19 }
 0x291   :  { %v678_v23 = vpop.f32.mrf.mxu0 }
 0x292   :  { %v575_v24 = vadd.f32 %v677_v22, %v642_v21 }
 0x293   :  { %v679_v25 = vpop.f32.mrf.mxu0 }
 0x294   :  { %580 = vmax.xlane.f32.xlu0 %v575_v24 }
 0x31d   :  { %v581_v26 = vpop.xlane.xlu0 %580 }
 0x31e   :  { %v582_v27 = vsub.f32 %v575_v24, %v581_v26 }
 0x320   :  { %v583_v28 = vmul.f32 1.442695, %v582_v27 }
 0x322   :  { %758 = vpow2.f32 %v583_v28 }
 0x32f   :  { %v759_v29 = vpop.eup %758 }
 0x330   :  { %585 = vadd.xlane.f32.xlu0 %v759_v29 }
 0x3b9   :  { %v586_v30 = vpop.xlane.xlu0 %585 }
 0x3ba   :  { %760 = vrcp.f32 %v586_v30 }
 0x3c7   :  { %v761_v31 = vpop.eup %760 }
 0x3c8   :  { %v588_v32 = vmul.f32 %v761_v31, %v759_v29 }
 0x3ca   :  { %589 = vst [vmem:[#allocation10] sm:$0xff] %v588_v32 }
 0x3cb   :  { %853 = shalt.err (!%p850_p10)
}
 0x3cc   :  { %599 = dma.vmem_to_hbm [thread:$0]  %s597_s26, 128, %s951_s7, [#allocation4]  }
 0x3cd   :  { %868 = dma.done.wait [#allocation4], 128  }
 0x3ce   :  { %869 = vsyncadd [#allocation4], 4294967168 }
 0x3cf   :  { %603 = vsyncpa [#allocation3], 1 }
 0x3d0   :  { %604 = vsyncpa [#allocation6], 1 }
 0x3d1   :  { %605 = vsyncpa [#allocation9], 1 }
 0x3d2   :  { %606 = vsyncpa [#allocation4], 1 }

</bundles_post_ra>
